<compile_context>
chip_gen: v6e
topology: v6e:2x2x1
jax: 0.10.0
libtpu: 0.0.40
codegen_flags: <defaults>
</compile_context>

<pallas_src>
import functools
import math

import jax
import jax.numpy as jnp
from jax.experimental import pallas as pl
from jax.experimental.pallas import tpu as pltpu


def _residual_block_kernel(x_ref, w1_ref, b1_ref, w2_ref, b2_ref,
                           gamma_ref, beta_ref, o_ref, acc_ref,
                           *, compute_dtype, eps):
    j = pl.program_id(1)
    nj = pl.num_programs(1)

    @pl.when(j == 0)
    def _init():
        acc_ref[...] = jnp.zeros_like(acc_ref)

    x = x_ref[...]                                   # (tm, H), input dtype
    xc = x.astype(compute_dtype)                     # MXU input dtype (f32 or bf16)

    # linear1 (column chunk j) + bias + relu  -> (tm, th), f32
    h = jnp.dot(xc, w1_ref[...], preferred_element_type=jnp.float32)
    h = jnp.maximum(h + b1_ref[...].astype(jnp.float32), 0.0)

    # dropout: identity in eval mode (documented above)

    # partial linear2: accumulate h_j @ W2[j, :] into the f32 accumulator
    acc_ref[...] += jnp.dot(h.astype(compute_dtype), w2_ref[...],
                            preferred_element_type=jnp.float32)

    @pl.when(j == nj - 1)
    def _finalize():
        z = acc_ref[...] + b2_ref[...].astype(jnp.float32) + x.astype(jnp.float32)
        # LayerNorm over last dim (eps matches nn.LayerNorm default)
        mean = jnp.mean(z, axis=-1, keepdims=True)
        cz = z - mean
        var = jnp.mean(cz * cz, axis=-1, keepdims=True)
        zn = cz * jax.lax.rsqrt(var + eps)
        out = zn * gamma_ref[...].astype(jnp.float32) + beta_ref[...].astype(jnp.float32)
        o_ref[...] = out.astype(o_ref.dtype)


def _round_up(a, b):
    return ((a + b - 1) // b) * b


def _pick_hidden_tile(H):
    for th in (512, 256, 128):
        if H % th == 0:
            return th
    return H  # small / odd H: keep the whole hidden dim in one block


def residual_block(x, w1, b1, w2, b2, gamma, beta, *,
                   tm=256, hidden_tile=None, mxu_dtype=None, eps=1e-5):
    """x: [B, H].  w1, w2: PyTorch layout [out, in].  b1, b2, gamma, beta: [H].

    mxu_dtype: dtype fed to the MXU (weights + activation casts).  Defaults to
    bf16 if x is bf16 else f32.  Pass jnp.bfloat16 on v6e/v7x for max throughput;
    accumulation / residual / LayerNorm always run in f32.
    """
    B, H = x.shape
    compute_dtype = mxu_dtype
    if compute_dtype is None:
        compute_dtype = jnp.bfloat16 if x.dtype == jnp.bfloat16 else jnp.float32

    # --- batch tiling: big tiles to fill the MXU, padded so B need not divide ---
    tm_eff = max(8, min(int(tm), _round_up(B, 8)))
    tm_eff = _round_up(tm_eff, 8)
    nb = -(-B // tm_eff)
    B_pad = nb * tm_eff
    x_in = jnp.pad(x, ((0, B_pad - B), (0, 0))) if B_pad != B else x

    # --- hidden tiling: weight slices (H, th) / (th, H) pipelined over axis 1 ---
    th = int(hidden_tile) if hidden_tile is not None else _pick_hidden_tile(H)
    assert H % th == 0, "hidden_tile must divide hidden_size"
    nh = H // th

    # pre-transpose weights so the kernel does x @ W  (== x @ W_pt.T)
    w1_t = jnp.asarray(w1).T.astype(compute_dtype)      # (H_in, H_out)
    w2_t = jnp.asarray(w2).T.astype(compute_dtype)
    b1_2d = jnp.asarray(b1).reshape(1, H).astype(jnp.float32)
    b2_2d = jnp.asarray(b2).reshape(1, H).astype(jnp.float32)
    g_2d = jnp.asarray(gamma).reshape(1, H).astype(jnp.float32)
    be_2d = jnp.asarray(beta).reshape(1, H).astype(jnp.float32)

    xbytes = jnp.dtype(x.dtype).itemsize
    wbytes = jnp.dtype(compute_dtype).itemsize

    # VMEM budget: double-buffered x/out/weight-slices + f32 accumulator + params.
    vmem_est = (2 * tm_eff * H * xbytes          # x tile (double-buffered)
                + 2 * tm_eff * H * xbytes        # out tile
                + 2 * H * th * wbytes            # W1 column chunk
                + 2 * th * H * wbytes            # W2 row chunk
                + tm_eff * H * 4                 # f32 accumulator scratch
                + 8 * H * 4)                     # biases / gamma / beta
    vmem_limit = int(vmem_est * 1.5) + (8 << 20)
    vmem_limit = max(32 << 20, min(vmem_limit, 100 << 20))

    cost = pl.CostEstimate(
        flops=4 * B_pad * H * H + 10 * B_pad * H,
        transcendentals=B_pad,  # one rsqrt per row
        bytes_accessed=(2 * B_pad * H * xbytes + 2 * H * H * wbytes + 8 * H * 4),
    )

    kernel = functools.partial(_residual_block_kernel,
                               compute_dtype=compute_dtype, eps=eps)

    out = pl.pallas_call(
        kernel,
        out_shape=jax.ShapeDtypeStruct((B_pad, H), x.dtype),
        grid_spec=pltpu.PrefetchScalarGridSpec(
            num_scalar_prefetch=0,
            grid=(nb, nh),
            in_specs=[
                pl.BlockSpec((tm_eff, H), lambda i, j: (i, 0)),   # x rows (resident over j)
                pl.BlockSpec((H, th), lambda i, j: (0, j)),       # W1^T column chunk
                pl.BlockSpec((1, th), lambda i, j: (0, j)),       # b1 chunk
                pl.BlockSpec((th, H), lambda i, j: (j, 0)),       # W2^T row chunk
                pl.BlockSpec((1, H), lambda i, j: (0, 0)),        # b2
                pl.BlockSpec((1, H), lambda i, j: (0, 0)),        # gamma
                pl.BlockSpec((1, H), lambda i, j: (0, 0)),        # beta
            ],
            out_specs=pl.BlockSpec((tm_eff, H), lambda i, j: (i, 0)),
            scratch_shapes=[pltpu.VMEM((tm_eff, H), jnp.float32)],
        ),
        compiler_params=pltpu.CompilerParams(
            dimension_semantics=("parallel", "arbitrary"),
            vmem_limit_bytes=vmem_limit),
        cost_estimate=cost,
    )(x_in, w1_t, b1_2d, w2_t, b2_2d, g_2d, be_2d)

    return out[:B] if B_pad != B else out


def _reference(x, w1, b1, w2, b2, gamma, beta):
    h = jnp.maximum(x @ w1.T + b1, 0.0)
    y = h @ w2.T + b2
    z = y + x
    mean = jnp.mean(z, axis=-1, keepdims=True)
    var = jnp.mean((z - mean) ** 2, axis=-1, keepdims=True)
    return (z - mean) / jnp.sqrt(var + 1e-5) * gamma + beta


if __name__ == "__main__":
    H = 128
    key = jax.random.PRNGKey(0)
    kx, k1, k2, k3, k4, kx2 = jax.random.split(key, 6)

    # deterministic parameter init (Kaiming-uniform-ish scale, like nn.Linear)
    bound = 1.0 / math.sqrt(H)
    w1 = jax.random.uniform(k1, (H, H), minval=-bound, maxval=bound, dtype=jnp.float32)
    b1 = jax.random.uniform(k2, (H,), minval=-bound, maxval=bound, dtype=jnp.float32)
    w2 = jax.random.uniform(k3, (H, H), minval=-bound, maxval=bound, dtype=jnp.float32)
    b2 = jax.random.uniform(k4, (H,), minval=-bound, maxval=bound, dtype=jnp.float32)
    gamma = jnp.ones((H,), dtype=jnp.float32)   # nn.LayerNorm default init
    beta = jnp.zeros((H,), dtype=jnp.float32)

    # 1) basic f32 path
    B = 8
    x = jax.random.normal(kx, (B, H), dtype=jnp.float32)
    out = jax.block_until_ready(residual_block(x, w1, b1, w2, b2, gamma, beta))
    ref = _reference(x, w1, b1, w2, b2, gamma, beta)
    assert out.shape == (B, H)
    assert jnp.allclose(out, ref, atol=1e-4, rtol=1e-4), "f32 mismatch vs reference"

    # 2) ragged batch (exercises padding + slice-back)
    B2 = 20
    x2 = jax.random.normal(kx2, (B2, H), dtype=jnp.float32)
    out2 = jax.block_until_ready(residual_block(x2, w1, b1, w2, b2, gamma, beta))
    ref2 = _reference(x2, w1, b1, w2, b2, gamma, beta)
    assert out2.shape == (B2, H)
    assert jnp.allclose(out2, ref2, atol=1e-4, rtol=1e-4), "padded-batch mismatch"

    # 3) bf16-fed MXU path (recommended on v6e/v7x); f32 accumulation + LayerNorm
    out3 = jax.block_until_ready(
        residual_block(x, w1, b1, w2, b2, gamma, beta, mxu_dtype=jnp.bfloat16))
    assert out3.shape == (B, H)
    assert jnp.allclose(out3, ref, atol=5e-2, rtol=5e-2), "bf16 path mismatch"

    print("KERNEL_OK")
</pallas_src>

<mosaic_0001>
module attributes {stable_mosaic.version = 11 : i64} {
  func.func @_residual_block_kernel(%arg0: i32, %arg1: i32, %arg2: memref<8x128xf32, #tpu.memory_space<vmem>>, %arg3: memref<128x128xf32, #tpu.memory_space<vmem>>, %arg4: memref<1x128xf32, #tpu.memory_space<vmem>>, %arg5: memref<128x128xf32, #tpu.memory_space<vmem>>, %arg6: memref<1x128xf32, #tpu.memory_space<vmem>>, %arg7: memref<1x128xf32, #tpu.memory_space<vmem>>, %arg8: memref<1x128xf32, #tpu.memory_space<vmem>>, %arg9: memref<8x128xf32, #tpu.memory_space<vmem>>, %arg10: memref<8x128xf32, #tpu.memory_space<vmem>>) attributes {dimension_semantics = [#tpu.dimension_semantics<parallel>, #tpu.dimension_semantics<arbitrary>], iteration_bounds = array<i64: 1, 1>, scalar_prefetch = 0 : i64, scratch_operands = 1 : i64, tpu.core_type = #tpu.core_type<tc>, window_params = [{transform_indices = @transform_0, window_bounds = array<i64: 8, 128>}, {transform_indices = @transform_1, window_bounds = array<i64: 128, 128>}, {transform_indices = @transform_2, window_bounds = array<i64: 1, 128>}, {transform_indices = @transform_3, window_bounds = array<i64: 128, 128>}, {pipeline_mode = #tpu.pipeline_mode<synchronous>, transform_indices = @transform_4, window_bounds = array<i64: 1, 128>}, {pipeline_mode = #tpu.pipeline_mode<synchronous>, transform_indices = @transform_5, window_bounds = array<i64: 1, 128>}, {pipeline_mode = #tpu.pipeline_mode<synchronous>, transform_indices = @transform_6, window_bounds = array<i64: 1, 128>}, {transform_indices = @transform_7, window_bounds = array<i64: 8, 128>}]} {
    %c0_i32 = arith.constant 0 : i32
    %0 = arith.cmpi eq, %arg1, %c0_i32 : i32
    %1 = arith.extui %0 : i1 to i32
    %c0_i32_0 = arith.constant 0 : i32
    %2 = arith.cmpi ne, %1, %c0_i32_0 : i32
    scf.if %2 {
      %cst_16 = arith.constant 0.000000e+00 : f32
      %19 = vector.broadcast %cst_16 : f32 to vector<8x128xf32>
      %c0_17 = arith.constant 0 : index
      %c0_18 = arith.constant 0 : index
      %20 = vector.load %arg10[%c0_17, %c0_18] : memref<8x128xf32, #tpu.memory_space<vmem>>, vector<8x128xf32>
      tpu.vector_store %arg10[%c0_17, %c0_18], %19 {strides = array<i32>} : memref<8x128xf32, #tpu.memory_space<vmem>>, vector<8x128xf32>,
    } else {
    }
    %c0 = arith.constant 0 : index
    %c0_1 = arith.constant 0 : index
    %3 = vector.load %arg2[%c0, %c0_1] : memref<8x128xf32, #tpu.memory_space<vmem>>, vector<8x128xf32>
    %c0_2 = arith.constant 0 : index
    %c0_3 = arith.constant 0 : index
    %4 = vector.load %arg3[%c0_2, %c0_3] : memref<128x128xf32, #tpu.memory_space<vmem>>, vector<128x128xf32>
    %cst = arith.constant dense<0.000000e+00> : vector<8x128xf32>
    %5 = tpu.matmul %3, %4, %cst {dimension_numbers = #tpu.dot_dimension_numbers<[1], [0], [0], [1], [0, 0, 1, 1], [], []>} : vector<8x128xf32>, vector<128x128xf32>, vector<8x128xf32> -> vector<8x128xf32>
    %c0_4 = arith.constant 0 : index
    %c0_5 = arith.constant 0 : index
    %6 = vector.load %arg4[%c0_4, %c0_5] : memref<1x128xf32, #tpu.memory_space<vmem>>, vector<1x128xf32>
    %7 = vector.broadcast %6 : vector<1x128xf32> to vector<8x128xf32>
    %8 = arith.addf %5, %7 : vector<8x128xf32>
    %cst_6 = arith.constant 0.000000e+00 : f32
    %9 = vector.broadcast %cst_6 : f32 to vector<8x128xf32>
    %10 = arith.maximumf %8, %9 : vector<8x128xf32>
    %c0_7 = arith.constant 0 : index
    %c0_8 = arith.constant 0 : index
    %11 = vector.load %arg10[%c0_7, %c0_8] : memref<8x128xf32, #tpu.memory_space<vmem>>, vector<8x128xf32>
    %c0_9 = arith.constant 0 : index
    %c0_10 = arith.constant 0 : index
    %12 = vector.load %arg5[%c0_9, %c0_10] : memref<128x128xf32, #tpu.memory_space<vmem>>, vector<128x128xf32>
    %cst_11 = arith.constant dense<0.000000e+00> : vector<8x128xf32>
    %13 = tpu.matmul %10, %12, %cst_11 {dimension_numbers = #tpu.dot_dimension_numbers<[1], [0], [0], [1], [0, 0, 1, 1], [], []>} : vector<8x128xf32>, vector<128x128xf32>, vector<8x128xf32> -> vector<8x128xf32>
    %14 = arith.addf %11, %13 : vector<8x128xf32>
    %c0_12 = arith.constant 0 : index
    %c0_13 = arith.constant 0 : index
    %15 = vector.load %arg10[%c0_12, %c0_13] : memref<8x128xf32, #tpu.memory_space<vmem>>, vector<8x128xf32>
    tpu.vector_store %arg10[%c0_12, %c0_13], %14 {strides = array<i32>} : memref<8x128xf32, #tpu.memory_space<vmem>>, vector<8x128xf32>,
    %c0_i32_14 = arith.constant 0 : i32
    %16 = arith.cmpi eq, %arg1, %c0_i32_14 : i32
    %17 = arith.extui %16 : i1 to i32
    %c0_i32_15 = arith.constant 0 : i32
    %18 = arith.cmpi ne, %17, %c0_i32_15 : i32
    scf.if %18 {
      %c0_16 = arith.constant 0 : index
      %c0_17 = arith.constant 0 : index
      %19 = vector.load %arg10[%c0_16, %c0_17] : memref<8x128xf32, #tpu.memory_space<vmem>>, vector<8x128xf32>
      %c0_18 = arith.constant 0 : index
      %c0_19 = arith.constant 0 : index
      %20 = vector.load %arg6[%c0_18, %c0_19] : memref<1x128xf32, #tpu.memory_space<vmem>>, vector<1x128xf32>
      %21 = vector.broadcast %20 : vector<1x128xf32> to vector<8x128xf32>
      %22 = arith.addf %19, %21 : vector<8x128xf32>
      %23 = arith.addf %22, %3 : vector<8x128xf32>
      %cst_20 = arith.constant dense<0.000000e+00> : vector<8xf32>
      %24 = vector.multi_reduction <add>, %23, %cst_20 [1] : vector<8x128xf32> to vector<8xf32>
      %25 = vector.shape_cast %24 : vector<8xf32> to vector<8x1xf32>
      %cst_21 = arith.constant 1.280000e+02 : f32
      %26 = vector.broadcast %cst_21 : f32 to vector<8x1xf32>
      %27 = arith.divf %25, %26 : vector<8x1xf32>
      %28 = vector.broadcast %27 : vector<8x1xf32> to vector<8x128xf32>
      %29 = arith.subf %23, %28 : vector<8x128xf32>
      %30 = arith.mulf %29, %29 : vector<8x128xf32>
      %cst_22 = arith.constant dense<0.000000e+00> : vector<8xf32>
      %31 = vector.multi_reduction <add>, %30, %cst_22 [1] : vector<8x128xf32> to vector<8xf32>
      %32 = vector.shape_cast %31 : vector<8xf32> to vector<8x1xf32>
      %cst_23 = arith.constant 1.280000e+02 : f32
      %33 = vector.broadcast %cst_23 : f32 to vector<8x1xf32>
      %34 = arith.divf %32, %33 : vector<8x1xf32>
      %cst_24 = arith.constant 9.99999974E-6 : f32
      %35 = vector.broadcast %cst_24 : f32 to vector<8x1xf32>
      %36 = arith.addf %34, %35 : vector<8x1xf32>
      %37 = math.rsqrt %36 : vector<8x1xf32>
      %38 = vector.broadcast %37 : vector<8x1xf32> to vector<8x128xf32>
      %39 = arith.mulf %29, %38 : vector<8x128xf32>
      %c0_25 = arith.constant 0 : index
      %c0_26 = arith.constant 0 : index
      %40 = vector.load %arg7[%c0_25, %c0_26] : memref<1x128xf32, #tpu.memory_space<vmem>>, vector<1x128xf32>
      %41 = vector.broadcast %40 : vector<1x128xf32> to vector<8x128xf32>
      %42 = arith.mulf %39, %41 : vector<8x128xf32>
      %c0_27 = arith.constant 0 : index
      %c0_28 = arith.constant 0 : index
      %43 = vector.load %arg8[%c0_27, %c0_28] : memref<1x128xf32, #tpu.memory_space<vmem>>, vector<1x128xf32>
      %44 = vector.broadcast %43 : vector<1x128xf32> to vector<8x128xf32>
      %45 = arith.addf %42, %44 : vector<8x128xf32>
      %c0_29 = arith.constant 0 : index
      %c0_30 = arith.constant 0 : index
      %46 = vector.load %arg9[%c0_29, %c0_30] : memref<8x128xf32, #tpu.memory_space<vmem>>, vector<8x128xf32>
      tpu.vector_store %arg9[%c0_29, %c0_30], %45 {strides = array<i32>} : memref<8x128xf32, #tpu.memory_space<vmem>>, vector<8x128xf32>,
    } else {
    }
    return
  }
  func.func @transform_0(%arg0: i32, %arg1: i32) -> (i32, i32) {
    %c0_i32 = arith.constant 0 : i32
    %c0_i32_0 = arith.constant 0 : i32
    return %arg0, %c0_i32 : i32, i32
  }
  func.func @transform_1(%arg0: i32, %arg1: i32) -> (i32, i32) {
    %c0_i32 = arith.constant 0 : i32
    %c0_i32_0 = arith.constant 0 : i32
    return %c0_i32, %arg1 : i32, i32
  }
  func.func @transform_2(%arg0: i32, %arg1: i32) -> (i32, i32) {
    %c0_i32 = arith.constant 0 : i32
    %c0_i32_0 = arith.constant 0 : i32
    return %c0_i32, %arg1 : i32, i32
  }
  func.func @transform_3(%arg0: i32, %arg1: i32) -> (i32, i32) {
    %c0_i32 = arith.constant 0 : i32
    %c0_i32_0 = arith.constant 0 : i32
    return %arg1, %c0_i32 : i32, i32
  }
  func.func @transform_4(%arg0: i32, %arg1: i32) -> (i32, i32) {
    %c0_i32 = arith.constant 0 : i32
    %c0_i32_0 = arith.constant 0 : i32
    %c0_i32_1 = arith.constant 0 : i32
    return %c0_i32, %c0_i32_0 : i32, i32
  }
  func.func @transform_5(%arg0: i32, %arg1: i32) -> (i32, i32) {
    %c0_i32 = arith.constant 0 : i32
    %c0_i32_0 = arith.constant 0 : i32
    %c0_i32_1 = arith.constant 0 : i32
    return %c0_i32, %c0_i32_0 : i32, i32
  }
  func.func @transform_6(%arg0: i32, %arg1: i32) -> (i32, i32) {
    %c0_i32 = arith.constant 0 : i32
    %c0_i32_0 = arith.constant 0 : i32
    %c0_i32_1 = arith.constant 0 : i32
    return %c0_i32, %c0_i32_0 : i32, i32
  }
  func.func @transform_7(%arg0: i32, %arg1: i32) -> (i32, i32) {
    %c0_i32 = arith.constant 0 : i32
    %c0_i32_0 = arith.constant 0 : i32
    return %arg0, %c0_i32 : i32, i32
  }
}

</mosaic_0001>

<bundles_post_ra>
// kernel: tpu_custom_call.1
= control target key start
LH: loop header
LB: loop body
LE: loop exit
PB: predicated region body
PF: predicated region fallthrough
CT: control target
= control target key end

     0   :  { %12 = vsyncpa [#allocation4], 0  ;;  %s623_s0 = inlined_call_operand.hbm [shape: f32[8,128], index: 0, kind: input, shape index: {}]   ;;  %s624_s1 = inlined_call_operand.hbm [shape: f32[128,128], index: 1, kind: input, shape index: {}]   ;;  %s625_s2 = inlined_call_operand.vmem [shape: f32[1,128], index: 2, kind: input, shape index: {}]   ;;  %s626_s3 = inlined_call_operand.hbm [shape: f32[128,128], index: 3, kind: input, shape index: {}]   ;;  %s627_s4 = inlined_call_operand.vmem [shape: f32[1,128], index: 4, kind: input, shape index: {}]   ;;  %s628_s5 = inlined_call_operand.vmem [shape: f32[1,128], index: 5, kind: input, shape index: {}]   ;;  %s629_s6 = inlined_call_operand.vmem [shape: f32[1,128], index: 6, kind: input, shape index: {}]   ;;  %s630_s7 = inlined_call_operand.hbm [shape: f32[8,128], index: 7, kind: output, shape index: {}]  }
   0x1   :  { %13 = vsyncpa [#allocation7], 0 }
   0x2   :  { %14 = vsyncpa [#allocation5], 0  ;;  %s517_s24 = smov [#allocation6]  }
   0x3   :  { %s30_s25 = sshll.u32 %s517_s24, 4  ;;  %s31_s25 = int_to_ptr.vmem [resolvable:$true] %s30_s25 }
   0x4   :  { %s439_s26 = scalar_lea.vmem %s31_s25, 2048  ;;  %p444_p1 = scmp.lt.s32.totalorder %s31_s25, %s31_s25 }
   0x5   :  { %p440_p0 = scmp.ne.s32.totalorder %s31_s25, %s439_s26  ;;  %p445_p2 = scmp.lt.s32.totalorder %s439_s26, %s439_s26 }
   0x7   :  { %p446_p3 = por %p445_p2, %p444_p1 }
   0x9   :  { %p447_p4 = pnand %p446_p3, %p440_p0 }
   0xb   :  { %450 = shalt.err (!%p447_p4)
}
   0xc   :  { %s518_s27 = smov 128   ;;  %s519_s28 = smov 8  }
   0xd   :  { %36 = dma.hbm_to_vmem [thread:$0]  %s624_s1, 2048, %s31_s25, [#allocation7], %s518_s27, %s518_s27, %s519_s28  }
   0xe   :  { %s520_s8 = smov [#allocation3]   ;;  %s521_s10 = smov [#allocation8]  }
   0xf   :  { %s21_s9 = sshll.u32 %s520_s8, 4  ;;  %s44_s11 = sshll.u32 %s521_s10, 4  ;;  %s22_s9 = int_to_ptr.vmem [resolvable:$true] %s21_s9  ;;  %s45_s11 = int_to_ptr.vmem [resolvable:$true] %s44_s11 }
  0x10   :  { %s459_s12 = scalar_lea.vmem %s22_s9, 128  ;;  %p464_p6 = scmp.lt.s32.totalorder %s22_s9, %s22_s9 }
  0x11   :  { %p460_p5 = scmp.ne.s32.totalorder %s22_s9, %s459_s12  ;;  %p465_p7 = scmp.lt.s32.totalorder %s459_s12, %s459_s12 }
  0x13   :  { %p466_p8 = por %p465_p7, %p464_p6 }
  0x15   :  { %p467_p9 = pnand %p466_p8, %p460_p5 }
  0x17   :  { %470 = shalt.err (!%p467_p9)
}
  0x18   :  { %24 = dma.hbm_to_vmem [thread:$0]  %s623_s0, 128, %s22_s9, [#allocation4]  }
  0x19   :  { %s479_s15 = scalar_lea.vmem %s45_s11, 2048  ;;  %p484_p11 = scmp.lt.s32.totalorder %s45_s11, %s45_s11 }
  0x1a   :  { %p480_p10 = scmp.ne.s32.totalorder %s45_s11, %s479_s15  ;;  %p485_p12 = scmp.lt.s32.totalorder %s479_s15, %s479_s15 }
  0x1c   :  { %p486_p13 = por %p485_p12, %p484_p11 }
  0x1e   :  { %p487_p0 = pnand %p486_p13, %p480_p10 }
  0x20   :  { %490 = shalt.err (!%p487_p0)
}
  0x21   :  { %50 = dma.hbm_to_vmem [thread:$0]  %s626_s3, 2048, %s45_s11, [#allocation7], %s518_s27, %s518_s27, %s519_s28  }
  0x22   :  { %511 = dma.done.wait [#allocation4], 128  }
  0x23   :  { %512 = vsyncadd [#allocation4], 4294967168 }
  0x24   :  { %513 = dma.done.wait [#allocation7], 4096  }
  0x25   :  { %514 = vsyncadd [#allocation7], 4294963200  ;;  %v522_v0 = vmov 0.0   ;;  %vm523_vm0 = vmmov 0   ;;  %v87_v1 = vld [vmem:[#allocation6 + $0x78] sm:$0xff]  ;;  %v86_v2 = vld [vmem:[#allocation6 + $0x70] sm:$0xff] }
  0x26   :  { %351 = vmatprep.subr.mxu0 %v522_v0  ;;  %383 = vmatprep.mubr.msk.f32.mxu0 %vm523_vm0, %v522_v0  ;;  %v85_v3 = vld [vmem:[#allocation6 + $0x68] sm:$0xff]  ;;  %v84_v4 = vld [vmem:[#allocation6 + $0x60] sm:$0xff]  ;;  %v182_v5 = vld [vmem:[#allocation8 + $0x78] sm:$0xff]  ;;  %s524_s21 = smov [#allocation9]  }
  0x27   :  { %386 = vmatprep.subr.mxu1 %v522_v0  ;;  %418 = vmatprep.mubr.msk.f32.mxu1 %vm523_vm0, %v522_v0  ;;  %v83_v6 = vld [vmem:[#allocation6 + $0x58] sm:$0xff]  ;;  %v181_v7 = vld [vmem:[#allocation8 + $0x70] sm:$0xff]  ;;  %v180_v8 = vld [vmem:[#allocation8 + $0x68] sm:$0xff]  ;;  %s303_s22 = sshll.u32 %s524_s21, 4  ;;  %s304_s22 = int_to_ptr.vmem [resolvable:$true] %s303_s22 }
  0x28   :  { %352 = vmatpush3.msra.mxu0 %v87_v1  ;;  %387 = vmatpush3.msra.mxu1 %v182_v5  ;;  %v82_v9 = vld [vmem:[#allocation6 + $0x50] sm:$0xff]  ;;  %v179_v10 = vld [vmem:[#allocation8 + $0x60] sm:$0xff]  ;;  %v81_v11 = vld [vmem:[#allocation6 + $0x48] sm:$0xff]  ;;  %s491_s23 = scalar_lea.vmem %s304_s22, 128  ;;  %p496_p2 = scmp.lt.s32.totalorder %s304_s22, %s304_s22 }
  0x29   :  { %353 = vmatprep.subr.mxu0 %v522_v0  ;;  %388 = vmatprep.subr.mxu1 %v522_v0  ;;  %v178_v12 = vld [vmem:[#allocation8 + $0x58] sm:$0xff]  ;;  %v80_v13 = vld [vmem:[#allocation6 + $0x40] sm:$0xff]  ;;  %v177_v14 = vld [vmem:[#allocation8 + $0x50] sm:$0xff]  ;;  %p492_p1 = scmp.ne.s32.totalorder %s304_s22, %s491_s23  ;;  %p497_p3 = scmp.lt.s32.totalorder %s491_s23, %s491_s23 }
  0x2a   :  { %354 = vmatpush3.msra.mxu0 %v86_v2  ;;  %389 = vmatpush3.msra.mxu1 %v181_v7  ;;  %v79_v15 = vld [vmem:[#allocation6 + $0x38] sm:$0xff]  ;;  %v176_v16 = vld [vmem:[#allocation8 + $0x48] sm:$0xff]  ;;  %v78_v17 = vld [vmem:[#allocation6 + $0x30] sm:$0xff] }
  0x2b   :  { %355 = vmatprep.subr.mxu0 %v522_v0  ;;  %390 = vmatprep.subr.mxu1 %v522_v0  ;;  %v175_v18 = vld [vmem:[#allocation8 + $0x40] sm:$0xff]  ;;  %v77_v19 = vld [vmem:[#allocation6 + $0x28] sm:$0xff]  ;;  %v174_v20 = vld [vmem:[#allocation8 + $0x38] sm:$0xff]  ;;  %p498_p4 = por %p497_p3, %p496_p2 }
  0x2c   :  { %356 = vmatpush3.msra.mxu0 %v85_v3  ;;  %391 = vmatpush3.msra.mxu1 %v180_v8  ;;  %v76_v21 = vld [vmem:[#allocation6 + $0x20] sm:$0xff]  ;;  %v173_v22 = vld [vmem:[#allocation8 + $0x30] sm:$0xff]  ;;  %v75_v23 = vld [vmem:[#allocation6 + $0x18] sm:$0xff] }
  0x2d   :  { %357 = vmatprep.subr.mxu0 %v522_v0  ;;  %392 = vmatprep.subr.mxu1 %v522_v0  ;;  %v172_v24 = vld [vmem:[#allocation8 + $0x28] sm:$0xff]  ;;  %v74_v25 = vld [vmem:[#allocation6 + $0x10] sm:$0xff]  ;;  %v171_v26 = vld [vmem:[#allocation8 + $0x20] sm:$0xff]  ;;  %p499_p5 = pnand %p498_p4, %p492_p1 }
  0x2e   :  { %358 = vmatpush3.msra.mxu0 %v84_v4  ;;  %393 = vmatpush3.msra.mxu1 %v179_v10  ;;  %v73_v27 = vld [vmem:[#allocation6 + $0x8] sm:$0xff]  ;;  %v170_v28 = vld [vmem:[#allocation8 + $0x18] sm:$0xff]  ;;  %v72_v29 = vld [vmem:[#allocation6] sm:$0xff] }
  0x2f   :  { %359 = vmatprep.subr.mxu0 %v522_v0  ;;  %394 = vmatprep.subr.mxu1 %v522_v0  ;;  %v71_v30 = vld [vmem:[#allocation3] sm:$0xff]  ;;  %v169_v31 = vld [vmem:[#allocation8 + $0x10] sm:$0xff]  ;;  %v168_v32 = vld [vmem:[#allocation8 + $0x8] sm:$0xff] }
  0x30   :  { %360 = vmatpush3.msra.mxu0 %v83_v6  ;;  %395 = vmatpush3.msra.mxu1 %v178_v12  ;;  %v167_v33 = vld [vmem:[#allocation8] sm:$0xff]  ;;  %v313_v34 = vld [vmem:[%s625_s2] ss:$0 sm:$0xff] }
  0x31   :  { %361 = vmatprep.subr.mxu0 %v522_v0  ;;  %396 = vmatprep.subr.mxu1 %v522_v0  ;;  %v314_v39 = vld [vmem:[%s627_s4] ss:$0 sm:$0xff] }
  0x32   :  { %362 = vmatpush3.msra.mxu0 %v82_v9  ;;  %397 = vmatpush3.msra.mxu1 %v177_v14  ;;  %v315_v52 = vld [vmem:[%s628_s5] ss:$0 sm:$0xff] }
  0x33   :  { %363 = vmatprep.subr.mxu0 %v522_v0  ;;  %398 = vmatprep.subr.mxu1 %v522_v0  ;;  %v316_v54 = vld [vmem:[%s629_s6] ss:$0 sm:$0xff] }
  0x34   :  { %364 = vmatpush3.msra.mxu0 %v81_v11  ;;  %399 = vmatpush3.msra.mxu1 %v176_v16 }
  0x35   :  { %365 = vmatprep.subr.mxu0 %v522_v0  ;;  %400 = vmatprep.subr.mxu1 %v522_v0 }
  0x36   :  { %366 = vmatpush3.msra.mxu0 %v80_v13  ;;  %401 = vmatpush3.msra.mxu1 %v175_v18 }
  0x37   :  { %367 = vmatprep.subr.mxu0 %v522_v0  ;;  %402 = vmatprep.subr.mxu1 %v522_v0 }
  0x38   :  { %368 = vmatpush3.msra.mxu0 %v79_v15  ;;  %403 = vmatpush3.msra.mxu1 %v174_v20 }
  0x39   :  { %369 = vmatprep.subr.mxu0 %v522_v0  ;;  %404 = vmatprep.subr.mxu1 %v522_v0 }
  0x3a   :  { %370 = vmatpush3.msra.mxu0 %v78_v17  ;;  %405 = vmatpush3.msra.mxu1 %v173_v22 }
  0x3b   :  { %371 = vmatprep.subr.mxu0 %v522_v0  ;;  %406 = vmatprep.subr.mxu1 %v522_v0 }
  0x3c   :  { %372 = vmatpush3.msra.mxu0 %v77_v19  ;;  %407 = vmatpush3.msra.mxu1 %v172_v24 }
  0x3d   :  { %373 = vmatprep.subr.mxu0 %v522_v0  ;;  %408 = vmatprep.subr.mxu1 %v522_v0 }
  0x3e   :  { %374 = vmatpush3.msra.mxu0 %v76_v21  ;;  %409 = vmatpush3.msra.mxu1 %v171_v26 }
  0x3f   :  { %375 = vmatprep.subr.mxu0 %v522_v0  ;;  %410 = vmatprep.subr.mxu1 %v522_v0 }
  0x40   :  { %376 = vmatpush3.msra.mxu0 %v75_v23  ;;  %411 = vmatpush3.msra.mxu1 %v170_v28 }
  0x41   :  { %377 = vmatprep.subr.mxu0 %v522_v0  ;;  %412 = vmatprep.subr.mxu1 %v522_v0 }
  0x42   :  { %378 = vmatpush3.msra.mxu0 %v74_v25  ;;  %413 = vmatpush3.msra.mxu1 %v169_v31 }
  0x43   :  { %379 = vmatprep.subr.mxu0 %v522_v0  ;;  %414 = vmatprep.subr.mxu1 %v522_v0 }
  0x44   :  { %380 = vmatpush3.msra.mxu0 %v73_v27  ;;  %415 = vmatpush3.msra.mxu1 %v168_v32 }
  0x45   :  { %381 = vmatprep.subr.mxu0 %v522_v0  ;;  %416 = vmatprep.subr.mxu1 %v522_v0 }
  0x46   :  { %382 = vmatpush3.msra.mxu0 %v72_v29  ;;  %417 = vmatpush3.msra.mxu1 %v167_v33 }
  0x47   :  { %384 = vmatmul.mubr.f32.vlgmr.msra.gmra.mxu0 %v71_v30 }
 0x107   :  { %v161_v35 = vpop.f32.mrf.mxu0 }
 0x108   :  { %v162_v36 = vadd.f32 %v313_v34, %v161_v35 }
 0x109   :  { %v385_v37 = vpop.f32.mrf.mxu0 }
 0x10a   :  { %v165_v38 = vmax.f32 %v162_v36, 0.0 }
 0x10c   :  { %419 = vmatmul.mubr.f32.vlgmr.msra.gmra.mxu1 %v165_v38 }
 0x1cc   :  { %v249_v40 = vpop.f32.mrf.mxu1 }
 0x1cd   :  { %v266_v41 = vadd.f32 %v314_v39, %v249_v40 }
 0x1ce   :  { %v420_v42 = vpop.f32.mrf.mxu1 }
 0x1cf   :  { %v267_v43 = vadd.f32 %v266_v41, %v71_v30 }
 0x1d1   :  { %268 = vadd.xlane.f32.xlu0 %v267_v43 }
 0x25a   :  { %v269_v44 = vpop.xlane.xlu0 %268 }
 0x25b   :  { %v271_v45 = vmul.f32 0.0078125, %v269_v44 }
 0x25d   :  { %v272_v46 = vsub.f32 %v267_v43, %v271_v45 }
 0x25f   :  { %v273_v47 = vmul.f32 %v272_v46, %v272_v46 }
 0x261   :  { %274 = vadd.xlane.f32.xlu0 %v273_v47 }
 0x2ea   :  { %v275_v48 = vpop.xlane.xlu0 %274 }
 0x2eb   :  { %v276_v49 = vmul.f32 0.0078125, %v275_v48 }
 0x2ed   :  { %v277_v50 = vadd.f32 1e-05, %v276_v49 }
 0x2ef   :  { %429 = vrsqrt.f32 %v277_v50 }
 0x2fc   :  { %v430_v51 = vpop.eup %429 }
 0x2fd   :  { %v279_v53 = vmul.f32 %v430_v51, %v272_v46 }
 0x2ff   :  { %v287_v55 = vmul.f32 %v315_v52, %v279_v53 }
 0x301   :  { %v295_v56 = vadd.f32 %v316_v54, %v287_v55 }
 0x303   :  { %296 = vst [vmem:[#allocation9] sm:$0xff] %v295_v56 }
 0x304   :  { %502 = shalt.err (!%p499_p5)
}
 0x305   :  { %306 = dma.vmem_to_hbm [thread:$0]  %s304_s22, 128, %s630_s7, [#allocation5]  }
 0x306   :  { %515 = dma.done.wait [#allocation5], 128  }
 0x307   :  { %516 = vsyncadd [#allocation5], 4294967168 }
 0x308   :  { %310 = vsyncpa [#allocation4], 1 }
 0x309   :  { %311 = vsyncpa [#allocation7], 1 }
 0x30a   :  { %312 = vsyncpa [#allocation5], 1 }

</bundles_post_ra>
